<compile_context>
chip_gen: v7x
topology: tpu7x:2x2x1
jax: 0.10.0
libtpu: 0.0.40
codegen_flags: <defaults>
</compile_context>

<pallas_src>
import jax
import jax.numpy as jnp
from jax.experimental import pallas as pl
from jax.experimental.pallas import tpu as pltpu

SIGMA = 3.0
SIGMA_SQ = SIGMA ** 2

_LANES = 128
_APC = _LANES // 4          # anchors per lane-dense row (4 channels / anchor)


def _detect_num_cores():
    """2 on multi-TensorCore chips (v4 / v5p / v7x), else 1. Safe fallback."""
    try:
        kind = jax.devices()[0].device_kind.lower()
    except Exception:
        return 1
    if any(t in kind for t in ("lite", "v5e", "v6e", "v2", "v3")):
        return 1
    return 2


def _make_kernel(Rp, Rb, NI, need_tail_mask):
    """Rp: total lane-dense rows; Rb: rows per block; NI: steps per core."""

    def kernel(pred_ref, tgt_ref, mask_ref, out_ref, acc_ref):
        i = pl.program_id(1)                       # reduction axis

        @pl.when(i == 0)
        def _init():
            acc_ref[...] = jnp.zeros_like(acc_ref)

        pred = pred_ref[...].astype(jnp.float32)   # (Rb, 128) lane-dense
        tgt = tgt_ref[...].astype(jnp.float32)     # (Rb, 128)
        m = mask_ref[...].astype(jnp.float32)      # (Rb, 128) 1.0 iff state==1

        d = jnp.abs(pred - tgt)
        huber = jnp.where(d < (1.0 / SIGMA_SQ),
                          (0.5 * SIGMA_SQ) * d * d,
                          d - 0.5 / SIGMA_SQ)
        loss_e = huber * m
        cnt_e = m

        if need_tail_mask:
            # Mask rows that fall past the real array (ragged last block and,
            # when the block count is odd across 2 cores, the clamped
            # duplicate block on the second core).
            p = pl.program_id(0)
            blk = p * NI + i                       # logical (unclamped) block
            rows = jax.lax.broadcasted_iota(jnp.int32, (Rb, _LANES), 0) + blk * Rb
            valid = rows < Rp
            loss_e = jnp.where(valid, loss_e, 0.0)
            cnt_e = jnp.where(valid, cnt_e, 0.0)

        # lane-parallel accumulation into one tiny merged scratch buffer
        acc_ref[0:1, :] += loss_e.sum(axis=0, keepdims=True)
        acc_ref[1:2, :] += cnt_e.sum(axis=0, keepdims=True)

        @pl.when(i == NI - 1)
        def _finalize():
            out_ref[...] = acc_ref[...].reshape(1, 2, _LANES)

    return kernel


def smooth_l1_loss(y_pred, y_true, *, tile_anchors=131072, num_cores=None):
    """y_pred: (B, N, 4), y_true: (B, N, 5). Returns scalar float32 loss."""
    B, N, C = y_pred.shape
    assert C == 4, "y_pred must be (B, N, 4)"
    assert y_true.shape == (B, N, 5), "y_true must be (B, N, 5)"
    M = B * N

    # ---- minimal wrapper pre-pass (no transposes) -------------------------
    # y_pred: pure reshape, no copy.  y_true: one fused elementwise pass
    # producing the target slab (f32) and a per-element positive mask (bf16,
    # pre-broadcast over the 4 channels so the kernel layout matches pred).
    pred2 = y_pred.reshape(M, 4)
    tgt2 = y_true[..., :4].reshape(M, 4)
    mask4 = jnp.broadcast_to(y_true[..., 4:] == 1.0, (B, N, 4))
    mask4 = mask4.reshape(M, 4).astype(jnp.bfloat16)

    # Lane-dense views need M % 32 == 0; pad only in that (uncommon) case.
    M32 = pl.cdiv(M, _APC) * _APC
    if M32 != M:
        pad = M32 - M                      # padded anchors: pred=tgt=mask=0
        pred2 = jnp.pad(pred2, ((0, pad), (0, 0)))
        tgt2 = jnp.pad(tgt2, ((0, pad), (0, 0)))
        mask4 = jnp.pad(mask4, ((0, pad), (0, 0)))
    Rp = M32 // _APC                       # rows of the (Rp, 128) views

    pred_l = pred2.reshape(Rp, _LANES)     # free reshape (row-major contiguous)
    tgt_l = tgt2.reshape(Rp, _LANES)
    mask_l = mask4.reshape(Rp, _LANES)

    # ---- tiling ------------------------------------------------------------
    P = num_cores if num_cores is not None else _detect_num_cores()
    rows_target = max(32, (tile_anchors // _APC // 32) * 32)
    rows_target = min(rows_target, 8192)   # keep double-buffered inputs << 32 MiB
    if Rp < 2 * 32:
        P = 1
        Rb = Rp                            # single full-extent block
    else:
        per_core = pl.cdiv(Rp, P)
        Rb = max(32, min(rows_target, (per_core // 32) * 32))
    nb = pl.cdiv(Rp, Rb)                   # total blocks
    NI = pl.cdiv(nb, P)                    # blocks per core
    need_tail_mask = (nb * Rb != Rp) or (P * NI != nb)

    def idx(p, i):
        # clamp so the DMA never starts past the array; the in-kernel row mask
        # (based on the unclamped logical block) zeroes any duplicated block.
        return (jnp.minimum(p * NI + i, nb - 1), 0)

    parts = pl.pallas_call(
        _make_kernel(Rp, Rb, NI, need_tail_mask),
        out_shape=jax.ShapeDtypeStruct((P, 2, _LANES), jnp.float32),
        grid_spec=pltpu.PrefetchScalarGridSpec(
            num_scalar_prefetch=0,
            grid=(P, NI),
            in_specs=[pl.BlockSpec((Rb, _LANES), idx),     # pred
                      pl.BlockSpec((Rb, _LANES), idx),     # target
                      pl.BlockSpec((Rb, _LANES), idx)],    # positive mask
            out_specs=pl.BlockSpec((1, 2, _LANES), lambda p, i: (p, 0, 0)),
            scratch_shapes=[pltpu.VMEM((2, _LANES), jnp.float32)],
        ),
        compiler_params=pltpu.CompilerParams(
            dimension_semantics=("parallel", "arbitrary"),
            vmem_limit_bytes=32 * 1024 * 1024),
    )(pred_l, tgt_l, mask_l)

    loss_sum = jnp.sum(parts[:, 0, :])
    n_pos = jnp.sum(parts[:, 1, :]) * 0.25          # mask was broadcast 4x
    return loss_sum / jnp.maximum(jnp.float32(1.0), n_pos)


def _reference(y_pred, y_true):
    """Pure-JAX reference mirroring the PyTorch forward."""
    tgt = y_true[:, :, :-1]
    state = y_true[:, :, -1]
    mask = (state == 1.0).astype(jnp.float32)[..., None]
    diff = jnp.abs(y_pred - tgt)
    loss = jnp.where(diff < 1.0 / SIGMA_SQ,
                     0.5 * SIGMA_SQ * diff * diff,
                     diff - 0.5 / SIGMA_SQ)
    n_pos = jnp.sum(mask[..., 0])
    return jnp.sum(loss * mask) / jnp.maximum(1.0, n_pos)


if __name__ == "__main__":
    key = jax.random.PRNGKey(0)
    ks = jax.random.split(key, 9)

    def make_case(kp, kt, kst, B, N):
        y_pred = jax.random.normal(kp, (B, N, 4), dtype=jnp.float32)
        tgt = jax.random.normal(kt, (B, N, 4), dtype=jnp.float32)
        state = jax.random.randint(kst, (B, N, 1), -1, 2).astype(jnp.float32)
        y_true = jnp.concatenate([tgt, state], axis=-1)
        return y_pred, y_true

    # case 1: lane-aligned anchor count (B=2, N=128 -> M=256)
    yp, yt = make_case(ks[0], ks[1], ks[2], 2, 128)
    out = jax.block_until_ready(smooth_l1_loss(yp, yt))
    ref = jax.block_until_ready(_reference(yp, yt))
    assert jnp.allclose(out, ref, rtol=1e-4, atol=1e-6), (out, ref)

    # case 2: unaligned anchor count (M=100, exercises the pad-to-32 fallback)
    yp, yt = make_case(ks[3], ks[4], ks[5], 1, 100)
    out = jax.block_until_ready(smooth_l1_loss(yp, yt))
    ref = jax.block_until_ready(_reference(yp, yt))
    assert jnp.allclose(out, ref, rtol=1e-4, atol=1e-6), (out, ref)

    # case 3: multi-step grid + ragged tail + 2-way core split + index clamp
    yp, yt = make_case(ks[6], ks[7], ks[8], 2, 4100)
    out = jax.block_until_ready(
        smooth_l1_loss(yp, yt, tile_anchors=2048, num_cores=2))
    ref = jax.block_until_ready(_reference(yp, yt))
    assert jnp.allclose(out, ref, rtol=1e-4, atol=1e-6), (out, ref)

    print("KERNEL_OK")
</pallas_src>

<mosaic_0001>
module attributes {stable_mosaic.version = 11 : i64} {
  func.func @kernel(%arg0: i32, %arg1: i32, %arg2: memref<8x128xf32, #tpu.memory_space<vmem>>, %arg3: memref<8x128xf32, #tpu.memory_space<vmem>>, %arg4: memref<8x128xbf16, #tpu.memory_space<vmem>>, %arg5: memref<1x2x128xf32, #tpu.memory_space<vmem>>, %arg6: memref<2x128xf32, #tpu.memory_space<vmem>>) attributes {dimension_semantics = [#tpu.dimension_semantics<parallel>, #tpu.dimension_semantics<arbitrary>], iteration_bounds = array<i64: 1, 1>, scalar_prefetch = 0 : i64, scratch_operands = 1 : i64, tpu.core_type = #tpu.core_type<tc>, window_params = [{transform_indices = @transform_0, window_bounds = array<i64: 8, 128>}, {transform_indices = @transform_1, window_bounds = array<i64: 8, 128>}, {transform_indices = @transform_2, window_bounds = array<i64: 8, 128>}, {transform_indices = @transform_3, window_bounds = array<i64: 1, 2, 128>}]} {
    %c0_i32 = arith.constant 0 : i32
    %0 = arith.cmpi eq, %arg1, %c0_i32 : i32
    %1 = arith.extui %0 : i1 to i32
    %c0_i32_0 = arith.constant 0 : i32
    %2 = arith.cmpi ne, %1, %c0_i32_0 : i32
    scf.if %2 {
      %cst_19 = arith.constant 0.000000e+00 : f32
      %31 = vector.broadcast %cst_19 : f32 to vector<2x128xf32>
      %c0_20 = arith.constant 0 : index
      %c0_21 = arith.constant 0 : index
      %32 = vector.load %arg6[%c0_20, %c0_21] : memref<2x128xf32, #tpu.memory_space<vmem>>, vector<2x128xf32>
      tpu.vector_store %arg6[%c0_20, %c0_21], %31 {strides = array<i32>} : memref<2x128xf32, #tpu.memory_space<vmem>>, vector<2x128xf32>,
    } else {
    }
    %c0 = arith.constant 0 : index
    %c0_1 = arith.constant 0 : index
    %3 = vector.load %arg2[%c0, %c0_1] : memref<8x128xf32, #tpu.memory_space<vmem>>, vector<8x128xf32>
    %c0_2 = arith.constant 0 : index
    %c0_3 = arith.constant 0 : index
    %4 = vector.load %arg3[%c0_2, %c0_3] : memref<8x128xf32, #tpu.memory_space<vmem>>, vector<8x128xf32>
    %c0_4 = arith.constant 0 : index
    %c0_5 = arith.constant 0 : index
    %5 = vector.load %arg4[%c0_4, %c0_5] : memref<8x128xbf16, #tpu.memory_space<vmem>>, vector<8x128xbf16>
    %6 = arith.extf %5 : vector<8x128xbf16> to vector<8x128xf32>
    %7 = arith.subf %3, %4 : vector<8x128xf32>
    %8 = math.absf %7 : vector<8x128xf32>
    %cst = arith.constant 0.111111112 : f32
    %9 = vector.broadcast %cst : f32 to vector<8x128xf32>
    %10 = arith.cmpf olt, %8, %9 : vector<8x128xf32>
    %cst_6 = arith.constant 4.500000e+00 : f32
    %11 = vector.broadcast %cst_6 : f32 to vector<8x128xf32>
    %12 = arith.mulf %11, %8 : vector<8x128xf32>
    %13 = arith.mulf %12, %8 : vector<8x128xf32>
    %cst_7 = arith.constant 0.055555556 : f32
    %14 = vector.broadcast %cst_7 : f32 to vector<8x128xf32>
    %15 = arith.subf %8, %14 : vector<8x128xf32>
    %16 = arith.select %10, %13, %15 : vector<8x128xi1>, vector<8x128xf32>
    %17 = arith.mulf %16, %6 : vector<8x128xf32>
    %c0_8 = arith.constant 0 : index
    %c0_9 = arith.constant 0 : index
    %18 = vector.load %arg6[%c0_8, %c0_9] : memref<2x128xf32, #tpu.memory_space<vmem>>, vector<1x128xf32>
    %cst_10 = arith.constant dense<0.000000e+00> : vector<128xf32>
    %19 = vector.multi_reduction <add>, %17, %cst_10 [0] : vector<8x128xf32> to vector<128xf32>
    %20 = vector.shape_cast %19 : vector<128xf32> to vector<1x128xf32>
    %21 = arith.addf %18, %20 : vector<1x128xf32>
    %c0_11 = arith.constant 0 : index
    %c0_12 = arith.constant 0 : index
    %22 = vector.load %arg6[%c0_11, %c0_12] : memref<2x128xf32, #tpu.memory_space<vmem>>, vector<1x128xf32>
    tpu.vector_store %arg6[%c0_11, %c0_12], %21 {strides = array<i32>} : memref<2x128xf32, #tpu.memory_space<vmem>>, vector<1x128xf32>,
    %c1 = arith.constant 1 : index
    %c0_13 = arith.constant 0 : index
    %23 = vector.load %arg6[%c1, %c0_13] : memref<2x128xf32, #tpu.memory_space<vmem>>, vector<1x128xf32>
    %cst_14 = arith.constant dense<0.000000e+00> : vector<128xf32>
    %24 = vector.multi_reduction <add>, %6, %cst_14 [0] : vector<8x128xf32> to vector<128xf32>
    %25 = vector.shape_cast %24 : vector<128xf32> to vector<1x128xf32>
    %26 = arith.addf %23, %25 : vector<1x128xf32>
    %c1_15 = arith.constant 1 : index
    %c0_16 = arith.constant 0 : index
    %27 = vector.load %arg6[%c1_15, %c0_16] : memref<2x128xf32, #tpu.memory_space<vmem>>, vector<1x128xf32>
    tpu.vector_store %arg6[%c1_15, %c0_16], %26 {strides = array<i32>} : memref<2x128xf32, #tpu.memory_space<vmem>>, vector<1x128xf32>,
    %c0_i32_17 = arith.constant 0 : i32
    %28 = arith.cmpi eq, %arg1, %c0_i32_17 : i32
    %29 = arith.extui %28 : i1 to i32
    %c0_i32_18 = arith.constant 0 : i32
    %30 = arith.cmpi ne, %29, %c0_i32_18 : i32
    scf.if %30 {
      %c0_19 = arith.constant 0 : index
      %c0_20 = arith.constant 0 : index
      %31 = vector.load %arg6[%c0_19, %c0_20] : memref<2x128xf32, #tpu.memory_space<vmem>>, vector<2x128xf32>
      %32 = vector.shape_cast %31 : vector<2x128xf32> to vector<1x2x128xf32>
      %c0_21 = arith.constant 0 : index
      %c0_22 = arith.constant 0 : index
      %c0_23 = arith.constant 0 : index
      %33 = vector.load %arg5[%c0_21, %c0_22, %c0_23] : memref<1x2x128xf32, #tpu.memory_space<vmem>>, vector<1x2x128xf32>
      tpu.vector_store %arg5[%c0_21, %c0_22, %c0_23], %32 {strides = array<i32>} : memref<1x2x128xf32, #tpu.memory_space<vmem>>, vector<1x2x128xf32>,
    } else {
    }
    return
  }
  func.func @transform_0(%arg0: i32, %arg1: i32) -> (i32, i32) {
    %c1_i32 = arith.constant 1 : i32
    %0 = arith.muli %arg0, %c1_i32 : i32
    %1 = arith.addi %0, %arg1 : i32
    %c0_i32 = arith.constant 0 : i32
    %2 = arith.minsi %1, %c0_i32 : i32
    %c0_i32_0 = arith.constant 0 : i32
    %c0_i32_1 = arith.constant 0 : i32
    return %2, %c0_i32_0 : i32, i32
  }
  func.func @transform_1(%arg0: i32, %arg1: i32) -> (i32, i32) {
    %c1_i32 = arith.constant 1 : i32
    %0 = arith.muli %arg0, %c1_i32 : i32
    %1 = arith.addi %0, %arg1 : i32
    %c0_i32 = arith.constant 0 : i32
    %2 = arith.minsi %1, %c0_i32 : i32
    %c0_i32_0 = arith.constant 0 : i32
    %c0_i32_1 = arith.constant 0 : i32
    return %2, %c0_i32_0 : i32, i32
  }
  func.func @transform_2(%arg0: i32, %arg1: i32) -> (i32, i32) {
    %c1_i32 = arith.constant 1 : i32
    %0 = arith.muli %arg0, %c1_i32 : i32
    %1 = arith.addi %0, %arg1 : i32
    %c0_i32 = arith.constant 0 : i32
    %2 = arith.minsi %1, %c0_i32 : i32
    %c0_i32_0 = arith.constant 0 : i32
    %c0_i32_1 = arith.constant 0 : i32
    return %2, %c0_i32_0 : i32, i32
  }
  func.func @transform_3(%arg0: i32, %arg1: i32) -> (i32, i32, i32) {
    %c0_i32 = arith.constant 0 : i32
    %c0_i32_0 = arith.constant 0 : i32
    %c0_i32_1 = arith.constant 0 : i32
    return %arg0, %c0_i32, %c0_i32_0 : i32, i32, i32
  }
}

</mosaic_0001>

<bundles_post_ra>
// kernel: tpu_custom_call.1
= control target key start
LH: loop header
LB: loop body
LE: loop exit
PB: predicated region body
PF: predicated region fallthrough
CT: control target
= control target key end

     0   :  { %8 = vsyncpa [#allocation4], 0  ;;  %s288_s0 = inlined_call_operand.hbm [shape: f32[8,128], index: 0, kind: input, shape index: {}]   ;;  %s289_s1 = inlined_call_operand.hbm [shape: f32[8,128], index: 1, kind: input, shape index: {}]   ;;  %s290_s2 = inlined_call_operand.vmem [shape: bf16[8,128], index: 2, kind: input, shape index: {}]   ;;  %s291_s3 = inlined_call_operand.hbm [shape: f32[1,2,128], index: 3, kind: output, shape index: {}]  }
   0x1   :  { %9 = vsyncpa [#allocation7], 0 }
   0x2   :  { %10 = vsyncpa [#allocation5], 0  ;;  %s225_s12 = smov [#allocation3]   ;;  %s226_s14 = smov [#allocation6]  }
   0x3   :  { %s22_s13 = sshll.u32 %s225_s12, 4  ;;  %s37_s15 = sshll.u32 %s226_s14, 4  ;;  %s23_s13 = int_to_ptr.vmem [resolvable:$true] %s22_s13  ;;  %s38_s15 = int_to_ptr.vmem [resolvable:$true] %s37_s15 }
   0x4   :  { %s153_s18 = scalar_lea.hbm %s288_s0, 128 }
   0x5   :  { %p154_p0 = scmp.ne.s32.totalorder %s288_s0, %s153_s18  ;;  %p157_p1 = scmp.lt.u32.totalorder %s153_s18, %s288_s0 }
   0x7   :  { %p159_p2 = pnand %p157_p1, %p154_p0 }
   0x9   :  { %162 = shalt.err (!%p159_p2)
}
   0xa   :  { %s163_s23 = scalar_lea.vmem %s23_s13, 128  ;;  %p168_p4 = scmp.lt.s32.totalorder %s23_s13, %s23_s13 }
   0xb   :  { %p164_p3 = scmp.ne.s32.totalorder %s23_s13, %s163_s23  ;;  %p169_p5 = scmp.lt.s32.totalorder %s163_s23, %s163_s23 }
   0xd   :  { %p170_p6 = por %p169_p5, %p168_p4 }
   0xf   :  { %p171_p7 = pnand %p170_p6, %p164_p3 }
  0x11   :  { %174 = shalt.err (!%p171_p7)
}
  0x12   :  { %25 = dma.hbm_to_vmem [thread:$0]  %s288_s0, 128, %s23_s13, [#allocation4]  }
  0x13   :  { %s175_s28 = scalar_lea.hbm %s289_s1, 128 }
  0x14   :  { %p176_p8 = scmp.ne.s32.totalorder %s289_s1, %s175_s28  ;;  %p179_p9 = scmp.lt.u32.totalorder %s175_s28, %s289_s1 }
  0x16   :  { %p181_p10 = pnand %p179_p9, %p176_p8 }
  0x18   :  { %184 = shalt.err (!%p181_p10)
}
  0x19   :  { %s185_s6 = scalar_lea.vmem %s38_s15, 128  ;;  %p190_p12 = scmp.lt.s32.totalorder %s38_s15, %s38_s15 }
  0x1a   :  { %p186_p11 = scmp.ne.s32.totalorder %s38_s15, %s185_s6  ;;  %p191_p13 = scmp.lt.s32.totalorder %s185_s6, %s185_s6 }
  0x1c   :  { %p192_p0 = por %p191_p13, %p190_p12 }
  0x1e   :  { %p193_p1 = pnand %p192_p0, %p186_p11 }
  0x20   :  { %196 = shalt.err (!%p193_p1)
}
  0x21   :  { %40 = dma.hbm_to_vmem [thread:$0]  %s289_s1, 128, %s38_s15, [#allocation7]  }
  0x22   :  { %219 = dma.done.wait [#allocation4], 128  }
  0x23   :  { %220 = vsyncadd [#allocation4], 4294967168 }
  0x24   :  { %221 = dma.done.wait [#allocation7], 128  }
  0x25   :  { %222 = vsyncadd [#allocation7], 4294967168  ;;  %v227_v0 = vmov 0.0   ;;  %v87_v1 = vld [vmem:[#allocation3] sm:$0xff]  ;;  %v88_v2 = vld [vmem:[#allocation6] sm:$0xff]  ;;  %s228_s1 = smov [#allocation8]  }
  0x26   :  { %86 = vst [vmem:[#allocation2] sm:$0x3] %v227_v0  ;;  %v89_v3 = vld [vmem:[%s290_s2] sm:$0xf]  ;;  %v91_v5 = vsub.f32 %v87_v1, %v88_v2  ;;  %s128_s2 = sshll.u32 %s228_s1, 4  ;;  %s129_s2 = int_to_ptr.vmem [resolvable:$true] %s128_s2 }
  0x27   :  { %v90_v4 = vunpack.c.l.bf16 %v89_v3  ;;  %s197_s10 = scalar_lea.vmem %s129_s2, 32  ;;  %p202_p3 = scmp.lt.s32.totalorder %s129_s2, %s129_s2 }
  0x28   :  { %v92_v6 = vand.u32 2147483647, %v91_v5  ;;  %p198_p2 = scmp.ne.s32.totalorder %s129_s2, %s197_s10  ;;  %p203_p4 = scmp.lt.s32.totalorder %s197_s10, %s197_s10 }
  0x29   :  { %v109_v7 = vrot.slane %v90_v4, 4 }
  0x2a   :  { %v94_v8 = vmul.f32 4.5, %v92_v6  ;;  %v148_v9 = vadd.f32 -0.055555556, %v92_v6  ;;  %vm93_vm0 = vcmp.lt.f32.partialorder %v92_v6, 0.11111111  ;;  %p204_p5 = por %p203_p4, %p202_p3 }
  0x2b   :  { %v110_v10 = vadd.f32 %v109_v7, %v90_v4 }
  0x2c   :  { %v95_v11 = vmul.f32 %v94_v8, %v92_v6  ;;  %p205_p6 = pnand %p204_p5, %p198_p2 }
  0x2d   :  { %v111_v12 = vrot.slane %v110_v10, 2  ;;  %v108_v18 = vld [vmem:[#allocation2 + $0x1] sm:$0x1]  ;;  %v99_v25 = vld [vmem:[#allocation2] sm:$0x1] }
  0x2e   :  { %v97_v13 = vsel %vm93_vm0, %v95_v11, %v148_v9 }
  0x2f   :  { %v112_v14 = vadd.f32 %v111_v12, %v110_v10  ;;  %v98_v15 = vmul.f32 %v97_v13, %v90_v4 }
  0x31   :  { %v113_v16 = vrot.slane %v112_v14, 1  ;;  %v100_v17 = vrot.slane %v98_v15, 4 }
  0x33   :  { %v114_v19 = vadd.f32 %v113_v16, %v112_v14  ;;  %v101_v20 = vadd.f32 %v100_v17, %v98_v15 }
  0x35   :  { %v115_v21 = vadd.f32 %v114_v19, %v108_v18  ;;  %v102_v22 = vrot.slane %v101_v20, 2 }
  0x37   :  { %116 = vst [vmem:[#allocation2 + $0x1] sm:$0x1] %v115_v21  ;;  %v103_v23 = vadd.f32 %v102_v22, %v101_v20 }
  0x39   :  { %v104_v24 = vrot.slane %v103_v23, 1 }
  0x3b   :  { %v105_v26 = vadd.f32 %v104_v24, %v103_v23 }
  0x3d   :  { %v106_v27 = vadd.f32 %v105_v26, %v99_v25 }
  0x3f   :  { %107 = vst [vmem:[#allocation2] sm:$0x1] %v106_v27 }
  0x46   :  { %v120_v28 = vld [vmem:[#allocation2] sm:$0x3] }
  0x47   :  { %121 = vst [vmem:[#allocation8] sm:$0x3] %v120_v28 }
  0x48   :  { %208 = shalt.err (!%p205_p6)
}
  0x49   :  { %s209_s13 = scalar_lea.hbm %s291_s3, 32 }
  0x4a   :  { %p210_p7 = scmp.ne.s32.totalorder %s291_s3, %s209_s13  ;;  %p213_p8 = scmp.lt.u32.totalorder %s209_s13, %s291_s3 }
  0x4c   :  { %p215_p9 = pnand %p213_p8, %p210_p7 }
  0x4e   :  { %218 = shalt.err (!%p215_p9)
}
  0x4f   :  { %131 = dma.vmem_to_hbm [thread:$0]  %s129_s2, 32, %s291_s3, [#allocation5]  }
  0x50   :  { %223 = dma.done.wait [#allocation5], 32  }
  0x51   :  { %224 = vsyncadd [#allocation5], 4294967264 }
  0x52   :  { %135 = vsyncpa [#allocation4], 1 }
  0x53   :  { %136 = vsyncpa [#allocation7], 1 }
  0x54   :  { %137 = vsyncpa [#allocation5], 1 }

</bundles_post_ra>
